<compile_context>
chip_gen: v6e
topology: v6e:2x2x1
jax: 0.10.0
libtpu: 0.0.40
codegen_flags: <defaults>
</compile_context>

<pallas_src>
import functools

import jax
import jax.numpy as jnp
from jax import lax
from jax.experimental import pallas as pl
from jax.experimental.pallas import tpu as pltpu


# --------------------------------------------------------------------------- #
# Kernel body
# --------------------------------------------------------------------------- #
def _sdpa_kernel(q_ref, k_ref, v_ref, ctx_ref, attn_ref, *, scale: float):
    # Blocks are (1, rows, cols); index away the leading singleton (bh) dim.
    q = q_ref[0]          # [tq, d_k]   (input dtype, fed straight to the MXU)
    k = k_ref[0]          # [lk, d_k]
    v = v_ref[0]          # [lk, d_v]

    # scores = (Q * 1/sqrt(d_k)) @ K^T  -- NT dot_general, no explicit K.T
    q_scaled = q * jnp.asarray(scale, q.dtype)
    scores = lax.dot_general(
        q_scaled, k,
        dimension_numbers=(((1,), (1,)), ((), ())),
        preferred_element_type=jnp.float32,
    )                                                   # [tq, lk] f32

    # Numerically stable softmax along the last axis.
    m = jnp.max(scores, axis=-1, keepdims=True)
    p = jnp.exp(scores - m)
    denom = jnp.sum(p, axis=-1, keepdims=True)
    # EUP approx reciprocal + one Newton step (full precision, no VALU divide).
    r = pl.reciprocal(denom, approx=True)
    r = r * (2.0 - denom * r)

    # Single cast over the (tq, lk) tile; reused for both the writeback and
    # the attn @ V matmul (no duplicate f32->lp cast pass).
    attn_lp = (p * r).astype(attn_ref.dtype)            # [tq, lk]
    attn_ref[0] = attn_lp

    # context = attn @ V (probabilities in V's dtype for the MXU; this astype
    # is a no-op when attn dtype == V dtype, which is the common case).
    ctx = lax.dot_general(
        attn_lp.astype(v.dtype), v,
        dimension_numbers=(((1,), (0,)), ((), ())),
        preferred_element_type=jnp.float32,
    )                                                   # [tq, d_v] f32
    ctx_ref[0] = ctx.astype(ctx_ref.dtype)


# --------------------------------------------------------------------------- #
# Generation-aware VMEM budgeting / tile selection
# --------------------------------------------------------------------------- #
def _vmem_capacity_bytes() -> int:
    """Physical per-core VMEM; conservative 64 MiB fallback (v7x per-TC)."""
    try:
        info = pltpu.get_tpu_info()
        cap = int(getattr(info, "vmem_capacity_bytes", 0))
        if cap > 0:
            return cap
    except Exception:
        pass
    return 64 * 1024 * 1024


def _choose_tq(Lq: int, Lk: int, Dk: int, Dv: int,
               in_itemsize: int, attn_itemsize: int, budget: int) -> int:
    """Pick an MXU-aligned query-tile size whose FULL per-step footprint
    (double-buffered K/V + double-buffered Q/ctx/attn tiles + f32 temps)
    fits inside `budget` bytes of VMEM."""
    # Fixed per-step residency: double-buffered full-Lk K and V blocks.
    fixed = 2 * Lk * (Dk + Dv) * in_itemsize

    # Cost per query row:
    #   2x Q in, 2x ctx out, 2x attn out (double-buffered) +
    #   ~3 live f32 (tq, Lk) intermediates (scores / p / attn) in the body.
    per_row = (2 * Dk * in_itemsize
               + 2 * Dv * in_itemsize
               + 2 * Lk * attn_itemsize
               + 3 * Lk * 4)

    avail = budget - fixed
    if avail <= 0:
        # K/V alone exceed the budget.
        # TODO(synk): Lk-tiled ("arbitrary" axis) variant for very long Lk.
        return min(Lq, 128)

    tq = avail // per_row
    if tq >= Lq:
        # Full-Lq block: always a legal block shape, fewest grid steps.
        return Lq

    # MXU-aligned tiles: multiples of 256 when possible (v6e/v7x 2x256x256
    # MXU), otherwise 128; never the old multiple-of-8 rounding (bad bf16
    # sublane packing, partially filled MXU passes).
    if tq >= 512:
        tq = (tq // 256) * 256
    elif tq >= 128:
        tq = (tq // 128) * 128
    else:
        # TODO(synk): below 128 rows the Lk-tiled variant should take over.
        tq = 128
    return min(tq, Lq)


# --------------------------------------------------------------------------- #
# Public wrapper
# --------------------------------------------------------------------------- #
def scaled_dot_product_attention(Q, K, V, attn_dtype=None):
    """
    Q: [batch, n_heads, len_q, d_k]
    K: [batch, n_heads, len_k, d_k]
    V: [batch, n_heads, len_k, d_v]
    Returns (context [batch, n_heads, len_q, d_v],
             attn    [batch, n_heads, len_q, len_k]).
    attn_dtype: dtype for the returned attention weights (default: Q.dtype).
                Pass jnp.bfloat16 to halve the attn HBM writeback stream if
                the caller tolerates reduced precision.
    """
    B, H, Lq, Dk = Q.shape
    _, _, Lk, _ = K.shape
    Dv = V.shape[-1]
    BH = B * H

    ctx_dtype = Q.dtype
    attn_dtype = Q.dtype if attn_dtype is None else jnp.dtype(attn_dtype)
    in_itemsize = jnp.dtype(Q.dtype).itemsize
    attn_itemsize = jnp.dtype(attn_dtype).itemsize

    # Fold (batch, heads) into one axis: simpler specs, one fewer grid dim.
    q3 = Q.reshape(BH, Lq, Dk)
    k3 = K.reshape(BH, Lk, Dk)
    v3 = V.reshape(BH, Lk, Dv)

    # Generation-aware budgets: ~40 MiB on v7x (64 MiB VMEM), ~96 MiB on
    # v5e/v6e (128 MiB VMEM).
    cap = _vmem_capacity_bytes()
    budget = max(16 * 1024 * 1024,
                 min(cap * 3 // 4, cap - 24 * 1024 * 1024))
    vmem_limit = max(32 * 1024 * 1024,
                     min(cap - 16 * 1024 * 1024, budget + 8 * 1024 * 1024))

    tq = _choose_tq(Lq, Lk, Dk, Dv, in_itemsize, attn_itemsize, budget)
    n_q_blocks = pl.cdiv(Lq, tq)

    kernel = functools.partial(_sdpa_kernel, scale=1.0 / float(Dk) ** 0.5)

    out_shapes = (
        jax.ShapeDtypeStruct((BH, Lq, Dv), ctx_dtype),   # context
        jax.ShapeDtypeStruct((BH, Lq, Lk), attn_dtype),  # attention weights
    )

    # qi is the innermost grid axis -> K/V blocks (index_map ignores qi) are
    # reused across consecutive q tiles of the same (batch, head).
    grid_spec = pltpu.PrefetchScalarGridSpec(
        num_scalar_prefetch=0,
        grid=(BH, n_q_blocks),
        in_specs=[
            pl.BlockSpec((1, tq, Dk), lambda bh, qi: (bh, qi, 0)),
            pl.BlockSpec((1, Lk, Dk), lambda bh, qi: (bh, 0, 0)),
            pl.BlockSpec((1, Lk, Dv), lambda bh, qi: (bh, 0, 0)),
        ],
        out_specs=[
            pl.BlockSpec((1, tq, Dv), lambda bh, qi: (bh, qi, 0)),
            pl.BlockSpec((1, tq, Lk), lambda bh, qi: (bh, qi, 0)),
        ],
    )

    cost = pl.CostEstimate(
        flops=2 * BH * Lq * Lk * (Dk + Dv),
        transcendentals=BH * Lq * Lk,
        bytes_accessed=(
            BH * Lq * Dk * in_itemsize           # Q
            + BH * Lk * Dk * in_itemsize         # K
            + BH * Lk * Dv * in_itemsize         # V
            + BH * Lq * Dv * in_itemsize         # context
            + BH * Lq * Lk * attn_itemsize       # attn
        ),
    )

    ctx3, attn3 = pl.pallas_call(
        kernel,
        out_shape=out_shapes,
        grid_spec=grid_spec,
        compiler_params=pltpu.CompilerParams(
            # Both axes independent -> shard across v7x's two TensorCores.
            dimension_semantics=("parallel", "parallel"),
            vmem_limit_bytes=vmem_limit,
        ),
        cost_estimate=cost,
    )(q3, k3, v3)

    return ctx3.reshape(B, H, Lq, Dv), attn3.reshape(B, H, Lq, Lk)


# --------------------------------------------------------------------------- #
# Reference + self-test
# --------------------------------------------------------------------------- #
def _reference(Q, K, V):
    d_k = Q.shape[-1]
    scores = jnp.einsum("bhqd,bhkd->bhqk", Q, K) / jnp.sqrt(jnp.float32(d_k))
    attn = jax.nn.softmax(scores, axis=-1)
    ctx = jnp.einsum("bhqk,bhkd->bhqd", attn, V)
    return ctx, attn


if __name__ == "__main__":
    key = jax.random.PRNGKey(0)
    kq, kk, kv = jax.random.split(key, 3)

    # batch=2, n_heads=4, len_q=len_k=8, d_k=d_v=32
    B, H, L, D = 2, 4, 8, 32
    Q = jax.random.normal(kq, (B, H, L, D), dtype=jnp.float32)
    K = jax.random.normal(kk, (B, H, L, D), dtype=jnp.float32)
    V = jax.random.normal(kv, (B, H, L, D), dtype=jnp.float32)

    ctx, attn = scaled_dot_product_attention(Q, K, V)
    jax.block_until_ready((ctx, attn))

    ctx_ref, attn_ref = _reference(Q, K, V)
    assert jnp.allclose(ctx, ctx_ref, atol=1e-4, rtol=1e-4), "context mismatch"
    assert jnp.allclose(attn, attn_ref, atol=1e-4, rtol=1e-4), "attn mismatch"

    print("KERNEL_OK")
</pallas_src>

<mosaic_0001>
module attributes {stable_mosaic.version = 11 : i64} {
  func.func @_sdpa_kernel(%arg0: i32, %arg1: i32, %arg2: memref<1x8x32xf32, #tpu.memory_space<vmem>>, %arg3: memref<1x8x32xf32, #tpu.memory_space<vmem>>, %arg4: memref<1x8x32xf32, #tpu.memory_space<vmem>>, %arg5: memref<1x8x32xf32, #tpu.memory_space<vmem>>, %arg6: memref<1x8x8xf32, #tpu.memory_space<vmem>>) attributes {dimension_semantics = [#tpu.dimension_semantics<parallel>, #tpu.dimension_semantics<parallel>], iteration_bounds = array<i64: 8, 1>, scalar_prefetch = 0 : i64, scratch_operands = 0 : i64, tpu.core_type = #tpu.core_type<tc>, window_params = [{transform_indices = @transform_0, window_bounds = array<i64: 1, 8, 32>}, {transform_indices = @transform_1, window_bounds = array<i64: 1, 8, 32>}, {transform_indices = @transform_2, window_bounds = array<i64: 1, 8, 32>}, {transform_indices = @transform_3, window_bounds = array<i64: 1, 8, 32>}, {transform_indices = @transform_4, window_bounds = array<i64: 1, 8, 8>}]} {
    %c0 = arith.constant 0 : index
    %c0_0 = arith.constant 0 : index
    %c0_1 = arith.constant 0 : index
    %0 = vector.load %arg2[%c0, %c0_0, %c0_1] : memref<1x8x32xf32, #tpu.memory_space<vmem>>, vector<1x8x32xf32>
    %1 = vector.shape_cast %0 : vector<1x8x32xf32> to vector<8x32xf32>
    %c0_2 = arith.constant 0 : index
    %c0_3 = arith.constant 0 : index
    %c0_4 = arith.constant 0 : index
    %2 = vector.load %arg3[%c0_2, %c0_3, %c0_4] : memref<1x8x32xf32, #tpu.memory_space<vmem>>, vector<1x8x32xf32>
    %3 = vector.shape_cast %2 : vector<1x8x32xf32> to vector<8x32xf32>
    %c0_5 = arith.constant 0 : index
    %c0_6 = arith.constant 0 : index
    %c0_7 = arith.constant 0 : index
    %4 = vector.load %arg4[%c0_5, %c0_6, %c0_7] : memref<1x8x32xf32, #tpu.memory_space<vmem>>, vector<1x8x32xf32>
    %5 = vector.shape_cast %4 : vector<1x8x32xf32> to vector<8x32xf32>
    %cst = arith.constant 0.176776692 : f32
    %6 = vector.broadcast %cst : f32 to vector<8x32xf32>
    %7 = arith.mulf %1, %6 : vector<8x32xf32>
    %cst_8 = arith.constant dense<0.000000e+00> : vector<8x8xf32>
    %8 = tpu.matmul %7, %3, %cst_8 {dimension_numbers = #tpu.dot_dimension_numbers<[1], [1], [0], [0], [0, 0, 1, 0], [], []>} : vector<8x32xf32>, vector<8x32xf32>, vector<8x8xf32> -> vector<8x8xf32>
    %cst_9 = arith.constant dense<0xFF800000> : vector<8xf32>
    %9 = vector.multi_reduction <maximumf>, %8, %cst_9 [1] : vector<8x8xf32> to vector<8xf32>
    %10 = vector.shape_cast %9 : vector<8xf32> to vector<8x1xf32>
    %11 = vector.broadcast %10 : vector<8x1xf32> to vector<8x8xf32>
    %12 = arith.subf %8, %11 : vector<8x8xf32>
    %13 = math.exp %12 : vector<8x8xf32>
    %cst_10 = arith.constant dense<0.000000e+00> : vector<8xf32>
    %14 = vector.multi_reduction <add>, %13, %cst_10 [1] : vector<8x8xf32> to vector<8xf32>
    %15 = vector.shape_cast %14 : vector<8xf32> to vector<8x1xf32>
    %16 = tpu.reciprocal %15 {approx = true} : vector<8x1xf32> -> vector<8x1xf32>
    %17 = arith.mulf %15, %16 : vector<8x1xf32>
    %cst_11 = arith.constant 2.000000e+00 : f32
    %18 = vector.broadcast %cst_11 : f32 to vector<8x1xf32>
    %19 = arith.subf %18, %17 : vector<8x1xf32>
    %20 = arith.mulf %16, %19 : vector<8x1xf32>
    %21 = vector.broadcast %20 : vector<8x1xf32> to vector<8x8xf32>
    %22 = arith.mulf %13, %21 : vector<8x8xf32>
    %c0_12 = arith.constant 0 : index
    %c0_13 = arith.constant 0 : index
    %c0_14 = arith.constant 0 : index
    %23 = vector.load %arg6[%c0_12, %c0_13, %c0_14] : memref<1x8x8xf32, #tpu.memory_space<vmem>>, vector<1x8x8xf32>
    %24 = vector.shape_cast %23 : vector<1x8x8xf32> to vector<8x8xf32>
    %25 = vector.shape_cast %22 : vector<8x8xf32> to vector<1x8x8xf32>
    tpu.vector_store %arg6[%c0_12, %c0_13, %c0_14], %25 {strides = array<i32>} : memref<1x8x8xf32, #tpu.memory_space<vmem>>, vector<1x8x8xf32>,
    %cst_15 = arith.constant dense<0.000000e+00> : vector<8x32xf32>
    %26 = tpu.matmul %22, %5, %cst_15 {dimension_numbers = #tpu.dot_dimension_numbers<[1], [0], [0], [1], [0, 0, 1, 1], [], []>} : vector<8x8xf32>, vector<8x32xf32>, vector<8x32xf32> -> vector<8x32xf32>
    %c0_16 = arith.constant 0 : index
    %c0_17 = arith.constant 0 : index
    %c0_18 = arith.constant 0 : index
    %27 = vector.load %arg5[%c0_16, %c0_17, %c0_18] : memref<1x8x32xf32, #tpu.memory_space<vmem>>, vector<1x8x32xf32>
    %28 = vector.shape_cast %27 : vector<1x8x32xf32> to vector<8x32xf32>
    %29 = vector.shape_cast %26 : vector<8x32xf32> to vector<1x8x32xf32>
    tpu.vector_store %arg5[%c0_16, %c0_17, %c0_18], %29 {strides = array<i32>} : memref<1x8x32xf32, #tpu.memory_space<vmem>>, vector<1x8x32xf32>,
    return
  }
  func.func @transform_0(%arg0: i32, %arg1: i32) -> (i32, i32, i32) {
    %c0_i32 = arith.constant 0 : i32
    %c0_i32_0 = arith.constant 0 : i32
    return %arg0, %arg1, %c0_i32 : i32, i32, i32
  }
  func.func @transform_1(%arg0: i32, %arg1: i32) -> (i32, i32, i32) {
    %c0_i32 = arith.constant 0 : i32
    %c0_i32_0 = arith.constant 0 : i32
    %c0_i32_1 = arith.constant 0 : i32
    return %arg0, %c0_i32, %c0_i32_0 : i32, i32, i32
  }
  func.func @transform_2(%arg0: i32, %arg1: i32) -> (i32, i32, i32) {
    %c0_i32 = arith.constant 0 : i32
    %c0_i32_0 = arith.constant 0 : i32
    %c0_i32_1 = arith.constant 0 : i32
    return %arg0, %c0_i32, %c0_i32_0 : i32, i32, i32
  }
  func.func @transform_3(%arg0: i32, %arg1: i32) -> (i32, i32, i32) {
    %c0_i32 = arith.constant 0 : i32
    %c0_i32_0 = arith.constant 0 : i32
    return %arg0, %arg1, %c0_i32 : i32, i32, i32
  }
  func.func @transform_4(%arg0: i32, %arg1: i32) -> (i32, i32, i32) {
    %c0_i32 = arith.constant 0 : i32
    %c0_i32_0 = arith.constant 0 : i32
    return %arg0, %arg1, %c0_i32 : i32, i32, i32
  }
}

</mosaic_0001>

<bundles_post_ra>
// kernel: tpu_custom_call.1
= control target key start
LH: loop header
LB: loop body
LE: loop exit
PB: predicated region body
PF: predicated region fallthrough
CT: control target
= control target key end

     0   :  { %s1265_s0 = inlined_call_operand.hbm [shape: f32[8,8,32], index: 0, kind: input, shape index: {}]   ;;  %s1266_s1 = inlined_call_operand.hbm [shape: f32[8,8,32], index: 1, kind: input, shape index: {}]   ;;  %s1267_s2 = inlined_call_operand.hbm [shape: f32[8,8,32], index: 2, kind: input, shape index: {}]   ;;  %s1268_s3 = inlined_call_operand.hbm [shape: f32[8,8,32], index: 3, kind: output, shape index: {0}]   ;;  %s1269_s4 = inlined_call_operand.hbm [shape: f32[8,8,8], index: 4, kind: output, shape index: {1}]  }
   0x1   :  { %1273 = sst [smem:[#allocation18_spill]] %s1266_s1 }
   0x2   :  { %10 = vsyncpa [#allocation3], 0 }
   0x3   :  { %12 = vsyncpa [#allocation3 + $0x1], 0 }
   0x4   :  { %13 = vsyncpa [#allocation6], 0 }
   0x5   :  { %15 = vsyncpa [#allocation6 + $0x1], 0 }
   0x6   :  { %16 = vsyncpa [#allocation4], 0 }
   0x7   :  { %18 = vsyncpa [#allocation4 + $0x1], 0 }
   0x8   :  { %19 = vsyncpa [#allocation10], 0 }
   0x9   :  { %21 = vsyncpa [#allocation10 + $0x1], 0  ;;  %s1029_s15 = smov 0   ;;  %s1031_s16 = smov 0  }
   0xa   :  { %s1033_s17 = smov 0   ;;  %s1035_s18 = smov 0  }
   0xb   :  { %s1037_s19 = smov 0   ;;  %s1039_s20 = smov 0  }
   0xc LB: > { %1274 = sst [smem:[#allocation15_spill]] %s991_s19  ;;  %s1060_s21 = sadd.s32 4294967295, %s995_s20   ;;  %s995_s20 = sphi %s1039_s20, %s27_s20   ;;  %s991_s19 = sphi %s1037_s19, %s1287_s19   ;;  %s987_s18 = sphi %s1035_s18, %s1286_s18   ;;  %s983_s17 = sphi %s1033_s17, %s1290_s17   ;;  %s979_s16 = sphi %s1031_s16, %s1289_s16   ;;  %s975_s15 = sphi %s1029_s15, %s1288_s15  }
   0xd   : > { %s676_s22 = sadd.s32 4294967294, %s995_s20   ;;  %s39_s23 = sadd.s32 1, %s991_s19 }
   0xe   : > { %s48_s24 = sadd.s32 1, %s983_s17  ;;  %p41_p0 = scmp.ge.s32.totalorder %s39_s23, 8 }
   0xf   : > { %p55_p1 = scmp.ne.s32.totalorder %s983_s17, %s979_s16  ;;  %p56_p2 = scmp.eq.s32.totalorder %s995_s20, 0 }
  0x10   : > { %p61_p3 = scmp.ne.s32.totalorder %s979_s16, %s975_s15  ;;  %s1292_s23 = smov (%p41_p0, %s39_s23), 0 }
  0x11   : > { %1275 = sst [smem:[#allocation16_spill]] %s1292_s23  ;;  %p1072_p4 = por %p56_p2, %p55_p1 }
  0x12   : > { %p62_p5 = scmp.eq.s32.totalorder %s1060_s21, 0  ;;  %s43_s26 = ssub.s32 %s991_s19, %s1292_s23 }
  0x13   : > { %p139_p6 = scmp.eq.s32.totalorder %s1060_s21, 7  ;;  %p46_p7 = scmp.eq.s32.totalorder %s43_s26, 0 }
  0x14   : > { %p1080_p8 = por %p62_p5, %p61_p3  ;;  %p145_p10 = scmp.eq.s32.totalorder %s676_s22, 7 }
  0x15   : > { %p1084_p9 = por %p139_p6, %p55_p1  ;;  %p741_p12 = scmp.lt.s32.totalorder %s995_s20, 8 }
  0x16   : > { %s1089_s29 = scalar_select %p46_p7, %s983_s17, %s48_s24  }
  0x17   : > { %p1091_p11 = por %p145_p10, %p61_p3  ;;  %s1270_s5 = sand.u32 1, %s983_s17  }
  0x18   : > { %1279 = sst [smem:[#allocation17_spill]] %s1089_s29  ;;  %s1099_s6 = sshll.u32 %s1270_s5, 3 }
  0x19   : > { %s1102_s7 = sshll.u32 %s991_s19, 7  ;;  %p1106_p13 = pnand %p741_p12, %p1072_p4 }
  0x1a   : > { %s212_s9 = sand.u32 1, %s995_s20   ;;  %s1282_s1 = sld [smem:[#allocation18_spill]] }
  0x1b   : > { %s216_s13 = scalar_lea.vmem [#allocation5], %s1099_s6  ;;  %p685_p0 = scmp.ge.s32.totalorder %s995_s20, 1 }
  0x1c   : > { %s223_s14 = sshll.u32 %s216_s13, 4  ;;  %p246_p1 = scmp.lt.s32.totalorder %s995_s20, 9  ;;  %s224_s14 = int_to_ptr.vmem [resolvable:$true] %s223_s14 }
  0x1d   : > { %s1118_s22 = scalar_lea.sflag [#allocation6], %s212_s9  ;;  %p799_p2 = pneg %p1106_p13 }
  0x1e   : > { %s810_s24 = scalar_lea.vmem %s224_s14, 128  ;;  %s997_s25 = smov [#allocation5]  }
  0x1f   : > { %p811_p3 = scmp.ne.s32.totalorder %s224_s14, %s810_s24  ;;  %s815_s26 = sshll.u32 %s997_s25, 4  ;;  %s816_s26 = int_to_ptr.vmem [resolvable:$false] %s815_s26 }
  0x20   : > { %s221_s12 = scalar_lea.hbm %s1282_s1, %s1102_s7  ;;  %s817_s10 = scalar_lea.vmem %s816_s26, 256 }
  0x21   : > { %p813_p4 = pnand %p811_p3, %p799_p2  ;;  %p818_p6 = scmp.lt.s32.totalorder %s224_s14, %s816_s26 }
  0x22   : > { %p819_p7 = scmp.lt.s32.totalorder %s817_s10, %s810_s24 }
  0x23   : > { %p814_p5 = pneg %p813_p4 }
  0x24   : > { %p820_p10 = por %p819_p7, %p818_p6 }
  0x26   : > { %p821_p12 = pnand %p820_p10, %p814_p5 }
  0x28   : > { %824 = shalt.err (!%p821_p12)
}
  0x29   : > { %730 = dma.hbm_to_vmem [thread:$0]  (!%p1106_p13), %s221_s12, 128, %s224_s14, %s1118_s22  }
  0x2a   : > { %p1132_p3 = pnand %p685_p0, %p246_p1  ;;  %s203_s24 = scalar_lea.hbm %s1265_s0, %s1102_s7 }
  0x2b   : > { %s197_s25 = scalar_lea.vmem [#allocation2], %s1099_s6  ;;  %s239_s1 = scalar_lea.hbm %s1267_s2, %s1102_s7 }
  0x2c   : > { %s205_s26 = sshll.u32 %s197_s25, 4  ;;  %s1284_s23 = sand.u32 1, %s983_s17   ;;  %s206_s26 = int_to_ptr.vmem [resolvable:$true] %s205_s26 }
  0x2d   : > { %s194_s19 = scalar_lea.sflag [#allocation3], %s1284_s23  ;;  %s838_s12 = scalar_lea.vmem %s206_s26, 128 }
  0x2e   : > { %p839_p4 = scmp.ne.s32.totalorder %s206_s26, %s838_s12  ;;  %s998_s14 = smov [#allocation2]  }
  0x2f   : > { %s843_s29 = sshll.u32 %s998_s14, 4  ;;  %s844_s29 = int_to_ptr.vmem [resolvable:$false] %s843_s29 }
  0x30   : > { %p841_p0 = pnand %p839_p4, %p799_p2  ;;  %s845_s11 = scalar_lea.vmem %s844_s29, 256 }
  0x31   : > { %p846_p5 = scmp.lt.s32.totalorder %s206_s26, %s844_s29  ;;  %p847_p6 = scmp.lt.s32.totalorder %s845_s11, %s838_s12 }
  0x32   : > { %p842_p1 = pneg %p841_p0 }
  0x33   : > { %p848_p7 = por %p847_p6, %p846_p5 }
  0x35   : > { %p849_p10 = pnand %p848_p7, %p842_p1 }
  0x37   : > { %852 = shalt.err (!%p849_p10)
}
  0x38   : > { %727 = dma.hbm_to_vmem [thread:$0]  (!%p1106_p13), %s203_s24, 128, %s206_s26, %s194_s19  }
  0x39   : > { %s234_s23 = scalar_lea.vmem [#allocation7], %s1099_s6  ;;  %s999_s25 = smov [#allocation7]  }
  0x3a   : > { %s241_s5 = sshll.u32 %s234_s23, 4  ;;  %s871_s29 = sshll.u32 %s999_s25, 4  ;;  %s242_s5 = int_to_ptr.vmem [resolvable:$true] %s241_s5  ;;  %s872_s29 = int_to_ptr.vmem [resolvable:$false] %s871_s29 }
  0x3b   : > { %s866_s13 = scalar_lea.vmem %s242_s5, 128  ;;  %s873_s10 = scalar_lea.vmem %s872_s29, 256 }
  0x3c   : > { %p867_p12 = scmp.ne.s32.totalorder %s242_s5, %s866_s13  ;;  %p874_p1 = scmp.lt.s32.totalorder %s242_s5, %s872_s29 }
  0x3d   : > { %p875_p5 = scmp.lt.s32.totalorder %s873_s10, %s866_s13 }
  0x3e   : > { %p869_p4 = pnand %p867_p12, %p799_p2 }
  0x3f   : > { %p876_p6 = por %p875_p5, %p874_p1 }
  0x40   : > { %p870_p0 = pneg %p869_p4 }
  0x42   : > { %p877_p7 = pnand %p876_p6, %p870_p0 }
  0x44   : > { %880 = shalt.err (!%p877_p7)
}
  0x45   : > { %733 = dma.hbm_to_vmem [thread:$0]  (!%p1106_p13), %s239_s1, 128, %s242_s5, %s1118_s22  }
  0x46   : > { %250 = sbr.rel (%p1132_p3) target bundleno = 803 (0x323), region = 32  ;;  %s1167_s24 = sand.u32 (!%p1132_p3), 1, %s979_s16  }
  0x47   : > { %s1170_s26 = sshll.u32 (!%p1132_p3), %s1167_s24, 3  ;;  %s253_s8 = scalar_lea.sflag (!%p1132_p3), [#allocation3], %s1167_s24 }
  0x48   : > { %s256_s12 = scalar_lea.vmem (!%p1132_p3), [#allocation2], %s1170_s26 }
  0x4b   : > { %958 = dma.done.wait (%p1080_p8), %s253_s8, 128  }
  0x4c   : > { %960 = vsyncadd (%p1080_p8), %s253_s8, 4294967168  ;;  %s261_s1 = sand.u32 1, %s1060_s21   ;;  %s265_s22 = scalar_lea.vmem [#allocation5], %s1170_s26 }
  0x4d   : > { %s262_s7 = scalar_lea.sflag [#allocation6], %s261_s1 }
  0x4e   : > { %962 = dma.done.wait (%p1080_p8), %s262_s7, 256  }
  0x4f   : > { %964 = vsyncadd (%p1080_p8), %s262_s7, 4294967040  ;;  %v1000_v0 = vmov 0.0   ;;  %vm1001_vm0 = vmmov 0   ;;  %vm318_vm1 = vcmask 261120   ;;  %v315_v1 = vld [vmem:[%s265_s22] sm:$0xff]  ;;  %v314_v2 = vld [vmem:[%s256_s12] sm:$0xff] }
  0x50   : > { %704 = vmatprep.subr.mxu0 %v1000_v0  ;;  %706 = vmatprep.mubr.msk.f32.mxu0 %vm1001_vm0, %v1000_v0  ;;  %v317_v3 = vmul.f32 0.17677669, %v314_v2  ;;  %vm395_vm2 = vcmask 64512   ;;  %s274_s21 = scalar_lea.vmem [#allocation7], %s1170_s26  ;;  %s313_s27 = scalar_lea.vmem [#allocation9], %s1170_s26 }
  0x51   : > { %709 = vmatprep.subr.mxu1 %v1000_v0  ;;  %711 = vmatprep.mubr.msk.f32.mxu1 %vm1001_vm0, %v1000_v0  ;;  %v316_v12 = vld [vmem:[%s274_s21] sm:$0xff]  ;;  %s696_s9 = sshll.u32 %s987_s18, 7  ;;  %s519_s5 = sshll.u32 %s313_s27, 4  ;;  %s520_s5 = int_to_ptr.vmem [resolvable:$true] %s519_s5 }
  0x52   : > { %705 = vmatpush3.xpose.msk.msra.mxu0 %vm318_vm1, %v315_v1  ;;  %710 = vmatpush3.msra.mxu1 %v316_v12  ;;  %s517_s23 = scalar_lea.hbm %s1269_s4, %s696_s9  ;;  %s491_s13 = scalar_lea.sflag [#allocation10], %s1167_s24 }
  0x53   : > { %s881_s25 = scalar_lea.vmem %s520_s5, 128  ;;  %s1002_s29 = smov [#allocation9]  }
  0x54   : > { %p882_p8 = scmp.ne.s32.totalorder %s520_s5, %s881_s25  ;;  %s885_s10 = sshll.u32 %s1002_s29, 4  ;;  %s886_s10 = int_to_ptr.vmem [resolvable:$false] %s885_s10 }
  0x55   : > { %707 = vmatmul.mubr.msk.f32.vlgmr.msra.gmra.mxu0 %vm318_vm1, %v317_v3  ;;  %s887_s19 = scalar_lea.vmem %s886_s10, 256  ;;  %p888_p3 = scmp.lt.s32.totalorder %s520_s5, %s886_s10 }
  0x56   : > { %p883_p13 = pnand %p882_p8, %p1084_p9  ;;  %p889_p10 = scmp.lt.s32.totalorder %s887_s19, %s881_s25 }
  0x58   : > { %p884_p2 = pneg %p883_p13  ;;  %p890_p12 = por %p889_p10, %p888_p3 }
  0x5a   : > { %p891_p4 = pnand %p890_p12, %p884_p2 }
 0x115   : > { %v391_v4 = vpop.f32.mrf.mxu0 }
 0x116   : > { %v396_v5 = vsel %vm395_vm2, %v391_v4, -inf }
 0x117   : > { %397 = vmax.xlane.f32.xlu0 %v396_v5  ;;  %v708_v6 = vpop.f32.mrf.mxu0 }
 0x1a0   : > { %v398_v7 = vpop.xlane.xlu0 %397 }
 0x1a1   : > { %v399_v8 = vsub.f32 %v391_v4, %v398_v7 }
 0x1a3   : > { %v400_v9 = vmul.f32 1.442695, %v399_v8 }
 0x1a5   : > { %793 = vpow2.f32 %v400_v9 }
 0x1b2   : > { %v794_v10 = vpop.eup %793 }
 0x1b3   : > { %v402_v11 = vsel %vm395_vm2, %v794_v10, 0.0 }
 0x1b4   : > { %403 = vadd.xlane.f32.xlu0 %v402_v11 }
 0x23d   : > { %v404_v13 = vpop.xlane.xlu0 %403 }
 0x23e   : > { %795 = vrcp.f32 %v404_v13 }
 0x24b   : > { %v796_v14 = vpop.eup %795 }
 0x24c   : > { %v406_v15 = vmul.f32 %v796_v14, %v404_v13 }
 0x24e   : > { %v407_v16 = vsub.f32 2.0, %v406_v15 }
 0x250   : > { %v408_v17 = vmul.f32 %v796_v14, %v407_v16 }
 0x252   : > { %v409_v18 = vmul.f32 %v794_v10, %v408_v17 }
 0x254   : > { %712 = vmatmul.mubr.msk.f32.vlgmr.msra.gmra.mxu1 %vm395_vm2, %v409_v18  ;;  %410 = vst.msk [vmem:[%s313_s27] sm:$0xff] %vm395_vm2, %v409_v18 }
 0x255   : > { %894 = shalt.err (!%p891_p4)
}
 0x256   : > { %s895_s6 = scalar_lea.hbm %s517_s23, 128  ;;  %s899_s1 = scalar_lea.hbm %s1269_s4, 1024 }
 0x257   : > { %p896_p0 = scmp.ne.s32.totalorder %s517_s23, %s895_s6  ;;  %p900_p6 = scmp.lt.s32.totalorder %s517_s23, %s1269_s4 }
 0x258   : > { %p901_p7 = scmp.lt.s32.totalorder %s899_s1, %s895_s6 }
 0x259   : > { %p897_p1 = pnand %p896_p0, %p1084_p9 }
 0x25a   : > { %p902_p8 = por %p901_p7, %p900_p6 }
 0x25b   : > { %p898_p5 = pneg %p897_p1 }
 0x25d   : > { %p903_p13 = pnand %p902_p8, %p898_p5 }
 0x25f   : > { %906 = shalt.err (!%p903_p13)
}
 0x260   : > { %721 = dma.vmem_to_hbm [thread:$0]  (%p1084_p9), %s520_s5, 128, %s517_s23, %s491_s13  }
 0x261   : > { %s306_s21 = scalar_lea.vmem [#allocation8], %s1170_s26  ;;  %s1217_s25 = scalar_lea.hbm %s1268_s3, %s696_s9 }
 0x262   : > { %s505_s27 = sshll.u32 %s306_s21, 4  ;;  %s486_s29 = scalar_lea.sflag [#allocation4], %s1167_s24  ;;  %s1219_s27 = int_to_ptr.vmem [resolvable:$true] %s505_s27 }
 0x263   : > { %s907_s10 = scalar_lea.vmem %s1219_s27, 128  ;;  %s1003_s18 = smov [#allocation8]  }
 0x264   : > { %p908_p2 = scmp.ne.s32.totalorder %s1219_s27, %s907_s10  ;;  %s911_s26 = sshll.u32 %s1003_s18, 4  ;;  %s912_s26 = int_to_ptr.vmem [resolvable:$false] %s911_s26 }
 0x265   : > { %s913_s9 = scalar_lea.vmem %s912_s26, 256  ;;  %p914_p12 = scmp.lt.s32.totalorder %s1219_s27, %s912_s26 }
 0x266   : > { %p909_p3 = pnand %p908_p2, %p1084_p9  ;;  %p915_p4 = scmp.lt.s32.totalorder %s913_s9, %s907_s10 }
 0x268   : > { %p910_p10 = pneg %p909_p3  ;;  %p916_p0 = por %p915_p4, %p914_p12 }
 0x26a   : > { %p917_p1 = pnand %p916_p0, %p910_p10 }
 0x314   : > { %v480_v19 = vpop.f32.mrf.mxu1 }
 0x315   : > { %484 = vst.msk [vmem:[%s306_s21] sm:$0xff] %vm318_vm1, %v480_v19 }
 0x316   : > { %v713_v20 = vpop.f32.mrf.mxu1 }
 0x317   : > { %920 = shalt.err (!%p917_p1)
}
 0x318   : > { %s921_s23 = scalar_lea.hbm %s1217_s25, 128  ;;  %s925_s13 = scalar_lea.hbm %s1268_s3, 1024 }
 0x319   : > { %p922_p5 = scmp.ne.s32.totalorder %s1217_s25, %s921_s23  ;;  %p926_p8 = scmp.lt.s32.totalorder %s1217_s25, %s1268_s3 }
 0x31a   : > { %p927_p13 = scmp.lt.s32.totalorder %s925_s13, %s921_s23 }
 0x31b   : > { %p923_p6 = pnand %p922_p5, %p1084_p9 }
 0x31c   : > { %p928_p2 = por %p927_p13, %p926_p8 }
 0x31d   : > { %p924_p7 = pneg %p923_p6 }
 0x31f   : > { %p929_p3 = pnand %p928_p2, %p924_p7 }
 0x321   : > { %932 = shalt.err (!%p929_p3)
}
 0x322   : > { %720 = dma.vmem_to_hbm [thread:$0]  (%p1084_p9), %s1219_s27, 128, %s1217_s25, %s486_s29  }
 0x323 PF: > { %p742_p10 = scmp.ge.s32.totalorder %s995_s20, 2  ;;  %s531_s8 = sand.u32 1, %s975_s15  }
 0x324   : > { %s532_s12 = scalar_lea.sflag [#allocation4], %s531_s8 }
 0x325   : > { %p735_p12 = pnand %p742_p10, %p1091_p11 }
 0x327   : > { %p736_p4 = pneg %p735_p12 }
 0x329   : > { %966 = dma.done.wait (%p736_p4), %s532_s12, 128  }
 0x32a   : > { %968 = vsyncadd (%p736_p4), %s532_s12, 4294967168  ;;  %s541_s1 = scalar_lea.sflag [#allocation10], %s531_s8 }
 0x32b   : > { %970 = dma.done.wait (%p736_p4), %s541_s1, 128  }
 0x32c   : > { %972 = vsyncadd (%p736_p4), %s541_s1, 4294967168  ;;  %s27_s20 = sadd.s32 1, %s995_s20   ;;  %s1285_s28 = sld [smem:[#allocation17_spill]] }
 0x32d   : > { %p24_p0 = scmp.ge.s32.totalorder %s27_s20, 10   ;;  %s1286_s18 = sld [smem:[#allocation15_spill]] }
 0x32e   : > { %s1287_s19 = sld [smem:[#allocation16_spill]]  ;;  %s1288_s15 = smov %s979_s16 }
 0x32f   : > { %s1289_s16 = smov %s983_s17  ;;  %26 = sbr.rel (!%p24_p0) target bundleno = 12 (0xc), region = 118 }
 0x332   : > { %s1290_s17 = smov %s1285_s28 }
 0x334   :  { %546 = vsyncpa [#allocation3], 1 }
 0x335   :  { %548 = vsyncpa [#allocation3 + $0x1], 1 }
 0x336   :  { %549 = vsyncpa [#allocation6], 1 }
 0x337   :  { %551 = vsyncpa [#allocation6 + $0x1], 1 }
 0x338   :  { %552 = vsyncpa [#allocation4], 1 }
 0x339   :  { %554 = vsyncpa [#allocation4 + $0x1], 1 }
 0x33a   :  { %555 = vsyncpa [#allocation10], 1 }
 0x33b   :  { %557 = vsyncpa [#allocation10 + $0x1], 1 }

</bundles_post_ra>
